<compile_context>
chip_gen: v5e
topology: v5e:2x2
jax: 0.10.0
libtpu: 0.0.40
codegen_flags: <defaults>
</compile_context>

<pallas_src>
import functools

import jax
import jax.numpy as jnp
from jax.experimental import pallas as pl
from jax.experimental.pallas import tpu as pltpu

# --- module hyper-params (scaled down from 256/32/9 to small test sizes) ---
NUM_CAPS = 8      # num_capsules
IN_CH = 4         # in_channels
OUT_CH = 8        # out_channels
KSIZE = 9         # kernel_size
STRIDE = 2        # stride (padding=0)


def _round_up(x, m):
    return ((x + m - 1) // m) * m


def _pad2d(a, rows, cols):
    pr, pc = rows - a.shape[0], cols - a.shape[1]
    if pr == 0 and pc == 0:
        return a
    return jnp.pad(a, ((0, pr), (0, pc)))


def _largest_divisor_tile(dim, align, cap):
    """Largest t <= cap with t % align == 0 and dim % t == 0 (None if none)."""
    best = None
    t = align
    limit = min(dim, cap)
    while t <= limit:
        if dim % t == 0:
            best = t
        t += align
    return best


# ------------------------------ Pallas kernels ------------------------------
def _matmul_bias_step(w_ref, p_ref, b_ref, o_ref):
    """One (i, j, k) grid step of C = W @ P + b, accumulating into o_ref.

    The output block index (i, j) does not depend on k, so o_ref is
    VMEM-resident across the whole K loop (no separate accumulator scratch).
    """
    @pl.when(pl.program_id(2) == 0)
    def _init():
        # Start the accumulator at the broadcast conv bias (per output row).
        o_ref[...] = jnp.broadcast_to(b_ref[...], o_ref.shape)

    o_ref[...] += jnp.dot(w_ref[...], p_ref[...],
                          preferred_element_type=jnp.float32)


def _caps_fused_kernel(w_ref, p_ref, b_ref, g_ref, gt_ref, o_ref):
    """Matmul + bias with the capsule squash fused as the K-loop epilogue.

    w_ref : (tn, tk)   bf16  flattened conv weights (caps*oc rows, Cin*k*k cols)
    p_ref : (tk, tm)   bf16  im2col patches (K rows, B*Ho*Wo cols)
    b_ref : (tn, 1)    f32   conv bias per output row
    g_ref : (tm, tm/D) bf16  0/1 group-sum matrix (DMA'd once, VMEM resident)
    gt_ref: (tm/D, tm) bf16  its transpose (broadcast sums back onto lanes)
    o_ref : (tn, tm)   f32   squashed capsule outputs
    """
    _matmul_bias_step(w_ref, p_ref, b_ref, o_ref)

    @pl.when(pl.program_id(2) == pl.num_programs(2) - 1)
    def _finalize():
        u = o_ref[...]
        # Lane-group sum of squares over each route's D consecutive columns,
        # done lane-dense on the MXU against the precomputed 0/1 matrix.
        sq = jnp.dot((u * u).astype(jnp.bfloat16), g_ref[...],
                     preferred_element_type=jnp.float32)
        # squash scale: ||u|| / (1 + ||u||^2)  (NaN-free at ||u|| == 0).
        scale_g = jnp.sqrt(sq) / (1.0 + sq)
        scale = jnp.dot(scale_g.astype(jnp.bfloat16), gt_ref[...],
                        preferred_element_type=jnp.float32)
        o_ref[...] = u * scale


def _caps_plain_kernel(w_ref, p_ref, b_ref, o_ref):
    """Matmul + bias only (squash applied outside the kernel)."""
    _matmul_bias_step(w_ref, p_ref, b_ref, o_ref)


# --------------------------------- wrapper ---------------------------------
@functools.partial(jax.jit, static_argnums=(3,))
def primary_caps_forward(x, weights, biases, num_routes):
    """x: (B, Cin, H, W) f32; weights: (NUM_CAPS, OUT_CH, Cin, k, k);
    biases: (NUM_CAPS, OUT_CH).  Returns (B, num_routes, D) squashed caps."""
    B, Cin, H, W = x.shape
    Ho = (H - KSIZE) // STRIDE + 1
    Wo = (W - KSIZE) // STRIDE + 1
    HW = Ho * Wo
    N = NUM_CAPS * OUT_CH
    K = Cin * KSIZE * KSIZE
    M = B * HW
    D = (N * HW) // num_routes
    assert N * HW == num_routes * D

    # im2col in bf16 directly (cast BEFORE the patches op: no f32 patch matrix
    # plus separate cast copy in HBM).  "CNHW" output layout gives the
    # (K, B*Ho*Wo) right-hand side directly; feature order (Cin, kh, kw)
    # matches weights.reshape(N, K).
    patches = jax.lax.conv_general_dilated_patches(
        x.astype(jnp.bfloat16), filter_shape=(KSIZE, KSIZE),
        window_strides=(STRIDE, STRIDE), padding="VALID",
        dimension_numbers=("NCHW", "OIHW", "CNHW"))
    p_km = patches.reshape(K, M).astype(jnp.bfloat16)

    w_nk = weights.reshape(N, K).astype(jnp.bfloat16)
    b_n1 = biases.reshape(N, 1).astype(jnp.float32)

    # ---- tile selection: prefer exact divisors so padding is a no-op ----
    if N <= 512:
        tn, Np = N, N
    else:
        tn = _largest_divisor_tile(N, 8, 256) or 256
        Np = _round_up(N, tn)

    tk = _largest_divisor_tile(K, 128, 2304)
    if tk is not None:
        Kp = K
    elif K <= 4096:
        tk, Kp = K, K                       # single full-K block, no padding
    else:
        tk = 2048
        Kp = _round_up(K, tk)

    tm = _largest_divisor_tile(M, 128, 2304)
    if tm is not None:
        Mp = M
    elif M <= 4096:
        tm, Mp = M, M                       # single full-M block, no padding
    else:
        tm = 512
        Mp = _round_up(M, tm)

    w_pad = _pad2d(w_nk, Np, Kp)
    p_pad = _pad2d(p_km, Kp, Mp)
    b_pad = _pad2d(b_n1, Np, 1)

    grid = (Np // tn, Mp // tm, Kp // tk)

    # Fused lane-group squash requires each route's D elements to be D
    # consecutive columns of a single output row, with groups aligned to
    # M-tile boundaries.
    fuse_squash = (HW % D == 0) and (tm % D == 0)

    in_specs = [
        pl.BlockSpec((tn, tk), lambda i, j, k: (i, k)),   # weights
        pl.BlockSpec((tk, tm), lambda i, j, k: (k, j)),   # patches
        pl.BlockSpec((tn, 1), lambda i, j, k: (i, 0)),    # bias
    ]
    inputs = [w_pad, p_pad, b_pad]

    if fuse_squash:
        gD = tm // D
        grp = (jnp.arange(tm)[:, None] // D
               == jnp.arange(gD)[None, :]).astype(jnp.bfloat16)   # (tm, gD)
        in_specs += [
            pl.BlockSpec((tm, gD), lambda i, j, k: (0, 0)),   # G   (resident)
            pl.BlockSpec((gD, tm), lambda i, j, k: (0, 0)),   # G^T (resident)
        ]
        inputs += [grp, grp.T]
        kernel = _caps_fused_kernel
    else:
        gD = 0
        kernel = _caps_plain_kernel

    # VMEM budget for the chosen tiles (double-buffered bf16 inputs, f32
    # output, epilogue temporaries), clamped <= 56 MiB for v7x's 64 MiB
    # physical VMEM while still allowing the large-tm tiles on v5e/v6e.
    est = (2 * tn * tk * 2 + 2 * tk * tm * 2 + 2 * tn * tm * 4
           + 2 * tn * 128 * 4)
    if fuse_squash:
        est += 4 * tm * gD * 2 + tn * tm * 8
    vmem_limit = int(min(max(est * 5 // 4, 32 * 1024 * 1024),
                         56 * 1024 * 1024))

    c = pl.pallas_call(
        kernel,
        out_shape=jax.ShapeDtypeStruct((Np, Mp), jnp.float32),
        grid_spec=pltpu.PrefetchScalarGridSpec(
            num_scalar_prefetch=0,
            grid=grid,
            in_specs=in_specs,
            out_specs=pl.BlockSpec((tn, tm), lambda i, j, k: (i, j)),
        ),
        compiler_params=pltpu.CompilerParams(
            dimension_semantics=("parallel", "parallel", "arbitrary"),
            vmem_limit_bytes=vmem_limit),
    )(*inputs)

    # (N, B*HW) -> (B, num_routes, D): the torch stack(dim=1)+.view is the
    # row-major reinterpretation of the per-batch (caps, oc, Ho, Wo) block;
    # only a small transpose of the final tensor is needed.
    c = c[:N, :M].reshape(N, B, HW)
    out = jnp.transpose(c, (1, 0, 2)).reshape(B, num_routes, D)

    if not fuse_squash:
        # TODO(synk): fuse this squash for the HW % D != 0 case too (needs a
        # flat (B*num_routes, D)-view epilogue pass instead of lane groups).
        sq = jnp.sum(out * out, axis=-1, keepdims=True)
        out = out * (jnp.sqrt(sq) / (1.0 + sq))
    return out


# ------------------------- pure-JAX reference check -------------------------
def _reference(x, weights, biases, num_routes):
    us = []
    for c in range(NUM_CAPS):
        y = jax.lax.conv_general_dilated(
            x, weights[c], window_strides=(STRIDE, STRIDE), padding="VALID",
            dimension_numbers=("NCHW", "OIHW", "NCHW"),
        )
        us.append(y + biases[c][None, :, None, None])
    u = jnp.stack(us, axis=1).reshape(x.shape[0], num_routes, -1)
    sq = jnp.sum(u * u, axis=-1, keepdims=True)
    return sq * u / ((1.0 + sq) * jnp.sqrt(sq))


if __name__ == "__main__":
    key = jax.random.PRNGKey(0)
    kx, kw, kb = jax.random.split(key, 3)

    B, H, W = 2, 16, 16
    Ho = (H - KSIZE) // STRIDE + 1
    Wo = (W - KSIZE) // STRIDE + 1
    num_routes = OUT_CH * Ho * Wo          # analogous to 32 * 6 * 6 in the original
    D = (NUM_CAPS * OUT_CH * Ho * Wo) // num_routes

    x = jax.random.normal(kx, (B, IN_CH, H, W), dtype=jnp.float32)
    weights = 0.1 * jax.random.normal(
        kw, (NUM_CAPS, OUT_CH, IN_CH, KSIZE, KSIZE), dtype=jnp.float32)
    biases = 0.1 * jax.random.normal(kb, (NUM_CAPS, OUT_CH), dtype=jnp.float32)

    out = primary_caps_forward(x, weights, biases, num_routes)
    out = jax.block_until_ready(out)

    ref = jax.block_until_ready(_reference(x, weights, biases, num_routes))
    assert out.shape == (B, num_routes, D), out.shape
    assert jnp.allclose(out, ref, rtol=5e-2, atol=5e-2), "mismatch vs reference"

    print("KERNEL_OK")
</pallas_src>

<mosaic_0001>
module attributes {stable_mosaic.version = 11 : i64} {
  func.func @_caps_fused_kernel(%arg0: i32, %arg1: i32, %arg2: i32, %arg3: memref<64x324xbf16, #tpu.memory_space<vmem>>, %arg4: memref<324x32xbf16, #tpu.memory_space<vmem>>, %arg5: memref<64x1xf32, #tpu.memory_space<vmem>>, %arg6: memref<32x4xbf16, #tpu.memory_space<vmem>>, %arg7: memref<4x32xbf16, #tpu.memory_space<vmem>>, %arg8: memref<64x32xf32, #tpu.memory_space<vmem>>) attributes {dimension_semantics = [#tpu.dimension_semantics<parallel>, #tpu.dimension_semantics<parallel>, #tpu.dimension_semantics<arbitrary>], iteration_bounds = array<i64: 1, 1, 1>, scalar_prefetch = 0 : i64, scratch_operands = 0 : i64, tpu.core_type = #tpu.core_type<tc>, window_params = [{transform_indices = @transform_0, window_bounds = array<i64: 64, 324>}, {transform_indices = @transform_1, window_bounds = array<i64: 324, 32>}, {transform_indices = @transform_2, window_bounds = array<i64: 64, 1>}, {pipeline_mode = #tpu.pipeline_mode<synchronous>, transform_indices = @transform_3, window_bounds = array<i64: 32, 4>}, {pipeline_mode = #tpu.pipeline_mode<synchronous>, transform_indices = @transform_4, window_bounds = array<i64: 4, 32>}, {transform_indices = @transform_5, window_bounds = array<i64: 64, 32>}]} {
    %c0_i32 = arith.constant 0 : i32
    %0 = arith.cmpi eq, %arg2, %c0_i32 : i32
    %1 = arith.extui %0 : i1 to i32
    %c0_i32_0 = arith.constant 0 : i32
    %2 = arith.cmpi ne, %1, %c0_i32_0 : i32
    scf.if %2 {
      %c0_10 = arith.constant 0 : index
      %c0_11 = arith.constant 0 : index
      %12 = vector.load %arg5[%c0_10, %c0_11] : memref<64x1xf32, #tpu.memory_space<vmem>>, vector<64x1xf32>
      %13 = vector.shape_cast %12 : vector<64x1xf32> to vector<64x1xf32>
      %14 = vector.broadcast %13 : vector<64x1xf32> to vector<64x32xf32>
      %c0_12 = arith.constant 0 : index
      %c0_13 = arith.constant 0 : index
      %15 = vector.load %arg8[%c0_12, %c0_13] : memref<64x32xf32, #tpu.memory_space<vmem>>, vector<64x32xf32>
      tpu.vector_store %arg8[%c0_12, %c0_13], %14 {strides = array<i32>} : memref<64x32xf32, #tpu.memory_space<vmem>>, vector<64x32xf32>,
    } else {
    }
    %c0 = arith.constant 0 : index
    %c0_1 = arith.constant 0 : index
    %3 = vector.load %arg8[%c0, %c0_1] : memref<64x32xf32, #tpu.memory_space<vmem>>, vector<64x32xf32>
    %c0_2 = arith.constant 0 : index
    %c0_3 = arith.constant 0 : index
    %4 = vector.load %arg3[%c0_2, %c0_3] : memref<64x324xbf16, #tpu.memory_space<vmem>>, vector<64x324xbf16>
    %c0_4 = arith.constant 0 : index
    %c0_5 = arith.constant 0 : index
    %5 = vector.load %arg4[%c0_4, %c0_5] : memref<324x32xbf16, #tpu.memory_space<vmem>>, vector<324x32xbf16>
    %cst = arith.constant dense<0.000000e+00> : vector<64x32xf32>
    %6 = tpu.matmul %4, %5, %cst {dimension_numbers = #tpu.dot_dimension_numbers<[1], [0], [0], [1], [0, 0, 1, 1], [], []>} : vector<64x324xbf16>, vector<324x32xbf16>, vector<64x32xf32> -> vector<64x32xf32>
    %7 = arith.addf %3, %6 : vector<64x32xf32>
    %c0_6 = arith.constant 0 : index
    %c0_7 = arith.constant 0 : index
    %8 = vector.load %arg8[%c0_6, %c0_7] : memref<64x32xf32, #tpu.memory_space<vmem>>, vector<64x32xf32>
    tpu.vector_store %arg8[%c0_6, %c0_7], %7 {strides = array<i32>} : memref<64x32xf32, #tpu.memory_space<vmem>>, vector<64x32xf32>,
    %c0_i32_8 = arith.constant 0 : i32
    %9 = arith.cmpi eq, %arg2, %c0_i32_8 : i32
    %10 = arith.extui %9 : i1 to i32
    %c0_i32_9 = arith.constant 0 : i32
    %11 = arith.cmpi ne, %10, %c0_i32_9 : i32
    scf.if %11 {
      %c0_10 = arith.constant 0 : index
      %c0_11 = arith.constant 0 : index
      %12 = vector.load %arg8[%c0_10, %c0_11] : memref<64x32xf32, #tpu.memory_space<vmem>>, vector<64x32xf32>
      %13 = arith.mulf %12, %12 : vector<64x32xf32>
      %14 = arith.truncf %13 : vector<64x32xf32> to vector<64x32xbf16>
      %c0_12 = arith.constant 0 : index
      %c0_13 = arith.constant 0 : index
      %15 = vector.load %arg6[%c0_12, %c0_13] : memref<32x4xbf16, #tpu.memory_space<vmem>>, vector<32x4xbf16>
      %cst_14 = arith.constant dense<0.000000e+00> : vector<64x4xf32>
      %16 = tpu.matmul %14, %15, %cst_14 {dimension_numbers = #tpu.dot_dimension_numbers<[1], [0], [0], [1], [0, 0, 1, 1], [], []>} : vector<64x32xbf16>, vector<32x4xbf16>, vector<64x4xf32> -> vector<64x4xf32>
      %17 = math.sqrt %16 : vector<64x4xf32>
      %cst_15 = arith.constant 1.000000e+00 : f32
      %18 = vector.broadcast %cst_15 : f32 to vector<64x4xf32>
      %19 = arith.addf %18, %16 : vector<64x4xf32>
      %20 = arith.divf %17, %19 : vector<64x4xf32>
      %21 = arith.truncf %20 : vector<64x4xf32> to vector<64x4xbf16>
      %c0_16 = arith.constant 0 : index
      %c0_17 = arith.constant 0 : index
      %22 = vector.load %arg7[%c0_16, %c0_17] : memref<4x32xbf16, #tpu.memory_space<vmem>>, vector<4x32xbf16>
      %cst_18 = arith.constant dense<0.000000e+00> : vector<64x32xf32>
      %23 = tpu.matmul %21, %22, %cst_18 {dimension_numbers = #tpu.dot_dimension_numbers<[1], [0], [0], [1], [0, 0, 1, 1], [], []>} : vector<64x4xbf16>, vector<4x32xbf16>, vector<64x32xf32> -> vector<64x32xf32>
      %24 = arith.mulf %12, %23 : vector<64x32xf32>
      %c0_19 = arith.constant 0 : index
      %c0_20 = arith.constant 0 : index
      %25 = vector.load %arg8[%c0_19, %c0_20] : memref<64x32xf32, #tpu.memory_space<vmem>>, vector<64x32xf32>
      tpu.vector_store %arg8[%c0_19, %c0_20], %24 {strides = array<i32>} : memref<64x32xf32, #tpu.memory_space<vmem>>, vector<64x32xf32>,
    } else {
    }
    return
  }
  func.func @transform_0(%arg0: i32, %arg1: i32, %arg2: i32) -> (i32, i32) {
    %c0_i32 = arith.constant 0 : i32
    return %arg0, %arg2 : i32, i32
  }
  func.func @transform_1(%arg0: i32, %arg1: i32, %arg2: i32) -> (i32, i32) {
    %c0_i32 = arith.constant 0 : i32
    return %arg2, %arg1 : i32, i32
  }
  func.func @transform_2(%arg0: i32, %arg1: i32, %arg2: i32) -> (i32, i32) {
    %c0_i32 = arith.constant 0 : i32
    %c0_i32_0 = arith.constant 0 : i32
    return %arg0, %c0_i32 : i32, i32
  }
  func.func @transform_3(%arg0: i32, %arg1: i32, %arg2: i32) -> (i32, i32) {
    %c0_i32 = arith.constant 0 : i32
    %c0_i32_0 = arith.constant 0 : i32
    %c0_i32_1 = arith.constant 0 : i32
    return %c0_i32, %c0_i32_0 : i32, i32
  }
  func.func @transform_4(%arg0: i32, %arg1: i32, %arg2: i32) -> (i32, i32) {
    %c0_i32 = arith.constant 0 : i32
    %c0_i32_0 = arith.constant 0 : i32
    %c0_i32_1 = arith.constant 0 : i32
    return %c0_i32, %c0_i32_0 : i32, i32
  }
  func.func @transform_5(%arg0: i32, %arg1: i32, %arg2: i32) -> (i32, i32) {
    %c0_i32 = arith.constant 0 : i32
    return %arg0, %arg1 : i32, i32
  }
}

</mosaic_0001>

<bundles_post_ra>
// kernel: primary_caps_forward.1
= control target key start
LH: loop header
LB: loop body
LE: loop exit
PB: predicated region body
PF: predicated region fallthrough
CT: control target
= control target key end

     0   :  { %v1047_v3 = vmov 0   ;;  %vm343_vm0 = vcmask 1041408   ;;  %vm330_vm1 = vcmask 556032   ;;  %vm73_vm2 = vcmask 261120   ;;  %s1647_s1 = inlined_call_operand.vmem [shape: bf16[324,32], index: 1, kind: input, shape index: {}]   ;;  %s1648_s2 = inlined_call_operand.vmem [shape: f32[64,1], index: 2, kind: input, shape index: {}]   ;;  %s1649_s0 = inlined_call_operand.vmem [shape: bf16[64,324], index: 0, kind: input, shape index: {}]   ;;  %s1650_s3 = inlined_call_operand.vmem [shape: bf16[32,4], index: 3, kind: input, shape index: {}]   ;;  %s1651_s5 = inlined_call_operand.vmem [shape: f32[64,32], index: 5, kind: output, shape index: {}]   ;;  %s1652_s4 = inlined_call_operand.vmem [shape: bf16[4,32], index: 4, kind: input, shape index: {}]  }
   0x1   :  { %v992_v0 = vld [vmem:[%s1647_s1 + $0x38] sm:$0xff]  ;;  %v146_v2 = vld [vmem:[%s1647_s1 + $0xa0] sm:$0x3]  ;;  %1012 = vset.pattern.permute.xlu0 %v1047_v3  ;;  %1013 = vset.pattern.permute.xlu1 %v1047_v3  ;;  %v991_v5 = vld [vmem:[%s1647_s1 + $0x30] sm:$0xff]  ;;  %vm760_vm15 = vcmask 31744  }
   0x2   :  { %v1000_v1 = vld [vmem:[%s1647_s1 + $0x78] sm:$0xff]  ;;  %v288_v4 = vunpack.c.l.b16 %v146_v2  ;;  %1014 = vset.pattern.permute.xlu2 %v1047_v3  ;;  %347 = vmatpush.bf16.msra.mxu0 %v992_v0  ;;  %v999_v7 = vld [vmem:[%s1647_s1 + $0x70] sm:$0xff]  ;;  %v990_v10 = vld [vmem:[%s1647_s1 + $0x28] sm:$0xff] }
   0x3   :  { %376 = vmatpush.bf16.msra.mxu1 %v1000_v1  ;;  %v1004_v9 = vld [vmem:[%s1647_s1 + $0x98] sm:$0xff]  ;;  %v998_v11 = vld [vmem:[%s1647_s1 + $0x68] sm:$0xff]  ;;  %v25_v12 = vld [vmem:[%s1648_s2] sm:$0xff] }
   0x4   :  { %v309_v6 = vpack.c.b16 %v288_v4, %v288_v4  ;;  %35 = vperm.xlu0 %1012, %v25_v12   ;;  %v27_v13 = vld [vmem:[%s1648_s2 + $0x10] sm:$0xff]  ;;  %v989_v15 = vld [vmem:[%s1647_s1 + $0x20] sm:$0xff]  ;;  %v26_v17 = vld [vmem:[%s1648_s2 + $0x8] sm:$0xff] }
   0x5   :  { %v1003_v14 = vld [vmem:[%s1647_s1 + $0x90] sm:$0xff]  ;;  %v997_v16 = vld [vmem:[%s1647_s1 + $0x60] sm:$0xff]  ;;  %45 = vperm.xlu1 %1013, %v27_v13   ;;  %v1002_v18 = vld [vmem:[%s1647_s1 + $0x88] sm:$0xff] }
   0x6   :  { %v345_v8 = vsel %vm343_vm0, %v309_v6, 0  ;;  %348 = vmatpush.bf16.msra.mxu0 %v991_v5  ;;  %v988_v19 = vld [vmem:[%s1647_s1 + $0x18] sm:$0xff]  ;;  %v1001_v22 = vld [vmem:[%s1647_s1 + $0x80] sm:$0xff]  ;;  %v987_v23 = vld [vmem:[%s1647_s1 + $0x10] sm:$0xff] }
   0x7   :  { %408 = vmatpush.bf16.msra.mxu2 %v345_v8  ;;  %377 = vmatpush.bf16.msra.mxu1 %v999_v7  ;;  %v996_v20 = vld [vmem:[%s1647_s1 + $0x58] sm:$0xff]  ;;  %v835_v24 = vld [vmem:[%s1649_s0 + $0x8] sm:$0xf]  ;;  %v975_v25 = vld [vmem:[%s1649_s0 + $0x10] sm:$0xf0] }
   0x8   :  { %v28_v21 = vld [vmem:[%s1648_s2 + $0x18] sm:$0xff]  ;;  %v995_v26 = vld [vmem:[%s1647_s1 + $0x50] sm:$0xff]  ;;  %v836_v27 = vor.u32 %v975_v25, %v835_v24  ;;  %v986_v29 = vld [vmem:[%s1647_s1 + $0x8] sm:$0xff] }
   0x9   :  { %v31_v28 = vld [vmem:[%s1648_s2 + $0x30] sm:$0xff]  ;;  %v994_v30 = vld [vmem:[%s1647_s1 + $0x48] sm:$0xff]  ;;  %v32_v31 = vld [vmem:[%s1648_s2 + $0x38] sm:$0xff] }
   0xa   :  { %349 = vmatpush.bf16.msra.mxu0 %v990_v10  ;;  %v985_v32 = vld [vmem:[%s1647_s1] sm:$0xff]  ;;  %v974_v34 = vld [vmem:[%s1649_s0 + $0x8] sm:$0xf0]  ;;  %v829_v37 = vld [vmem:[%s1649_s0 + $0xc] sm:$0xf0] }
   0xb   :  { %409 = vmatpush.bf16.msra.mxu2 %v1004_v9  ;;  %378 = vmatpush.bf16.msra.mxu1 %v998_v11  ;;  %v827_v33 = vld [vmem:[%s1649_s0] sm:$0xf]  ;;  %v973_v36 = vld [vmem:[%s1649_s0 + $0x4] sm:$0xf]  ;;  %v978_v41 = vld [vmem:[%s1649_s0 + $0x28] sm:$0xf0] }
   0xc   :  { %40 = vperm.xlu0 %1012, %v26_v17   ;;  %v993_v35 = vld [vmem:[%s1647_s1 + $0x40] sm:$0xff]  ;;  %v828_v38 = vor.u32 %v974_v34, %v827_v33  ;;  %v832_v39 = vor.u32 %v973_v36, %v829_v37  ;;  %v839_v43 = vld [vmem:[%s1649_s0 + $0x18] sm:$0xf]  ;;  %v976_v45 = vld [vmem:[%s1649_s0 + $0x1c] sm:$0xf] }
   0xd   :  { %50 = vperm.xlu1 %1013, %v28_v21   ;;  %v847_v40 = vld [vmem:[%s1649_s0 + $0x20] sm:$0xf]  ;;  %v977_v44 = vld [vmem:[%s1649_s0 + $0x20] sm:$0xf0]  ;;  %v841_v46 = vld [vmem:[%s1649_s0 + $0x24] sm:$0xf0] }
   0xe   :  { %350 = vmatpush.bf16.msra.mxu0 %v989_v15  ;;  %v848_v42 = vor.u32 %v978_v41, %v847_v40  ;;  %v840_v47 = vor.u32 %v977_v44, %v839_v43  ;;  %v844_v48 = vor.u32 %v976_v45, %v841_v46  ;;  %v859_v49 = vld [vmem:[%s1649_s0 + $0x38] sm:$0xf]  ;;  %v981_v50 = vld [vmem:[%s1649_s0 + $0x40] sm:$0xf0]  ;;  %v1006_v52 = vld [vmem:[%s1650_s3 + $0x8] sm:$0xff] }
   0xf   :  { %410 = vmatpush.bf16.msra.mxu2 %v1003_v14  ;;  %379 = vmatpush.bf16.msra.mxu1 %v997_v16  ;;  %v29_v51 = vld [vmem:[%s1648_s2 + $0x20] sm:$0xff]  ;;  %v860_v53 = vor.u32 %v981_v50, %v859_v49  ;;  %v30_v54 = vld [vmem:[%s1648_s2 + $0x28] sm:$0xff]  ;;  %v851_v55 = vld [vmem:[%s1649_s0 + $0x30] sm:$0xf] }
  0x10   :  { %55 = vperm.xlu2 %1014, %v29_v51   ;;  %1008 = vmatpush.bf16.msra.mxu3 %v1006_v52  ;;  %v980_v56 = vld [vmem:[%s1649_s0 + $0x38] sm:$0xf0]  ;;  %v979_v57 = vld [vmem:[%s1649_s0 + $0x34] sm:$0xf]  ;;  %v853_v58 = vld [vmem:[%s1649_s0 + $0x3c] sm:$0xf0] }
  0x11   :  { %v852_v59 = vor.u32 %v980_v56, %v851_v55  ;;  %v856_v60 = vor.u32 %v979_v57, %v853_v58  ;;  %v871_v61 = vld [vmem:[%s1649_s0 + $0x50] sm:$0xf]  ;;  %v984_v62 = vld [vmem:[%s1649_s0 + $0x58] sm:$0xf0]  ;;  %v863_v0 = vld [vmem:[%s1649_s0 + $0x48] sm:$0xf] }
  0x12   :  { %351 = vmatpush.bf16.msra.mxu0 %v988_v19  ;;  %v872_v63 = vor.u32 %v984_v62, %v871_v61  ;;  %v983_v1 = vld [vmem:[%s1649_s0 + $0x50] sm:$0xf0]  ;;  %v982_v2 = vld [vmem:[%s1649_s0 + $0x4c] sm:$0xf]  ;;  %v865_v3 = vld [vmem:[%s1649_s0 + $0x54] sm:$0xf0] }
  0x13   :  { %411 = vmatpush.bf16.msra.mxu2 %v1002_v18  ;;  %380 = vmatpush.bf16.msra.mxu1 %v996_v20  ;;  %v864_v4 = vor.u32 %v983_v1, %v863_v0  ;;  %v868_v5 = vor.u32 %v982_v2, %v865_v3  ;;  %v1005_v10 = vld [vmem:[%s1650_s3] sm:$0xff] }
  0x14   :  { %65 = vperm.xlu0 %1012, %v31_v28   ;;  %1010 = vmatpush.bf16.msra.mxu3 %v1005_v10 }
  0x15   :  { %70 = vperm.xlu1 %1013, %v32_v31  }
  0x16   :  { %352 = vmatpush.bf16.msra.mxu0 %v987_v23 }
  0x17   :  { %412 = vmatpush.bf16.msra.mxu2 %v1001_v22  ;;  %381 = vmatpush.bf16.msra.mxu1 %v995_v26 }
  0x18   :  { %60 = vperm.xlu2 %1014, %v30_v54  }
  0x1a   :  { %953 = vmatmul.msk.bf16.vlgmr.msra.gmra.mxu2 %vm330_vm1, %v836_v27  ;;  %353 = vmatpush.bf16.msra.mxu0 %v986_v29 }
  0x1b   :  { %382 = vmatpush.bf16.msra.mxu1 %v994_v30  ;;  %1007 = vmatpush.bf16.msrb.mxu2 %v1006_v52 }
  0x1e   :  { %354 = vmatpush.bf16.msra.mxu0 %v985_v32 }
  0x1f   :  { %383 = vmatpush.bf16.msra.mxu1 %v993_v35  ;;  %1009 = vmatpush.bf16.msrb.mxu2 %v1005_v10 }
  0x21   :  { %355 = vmatmul.bf16.vlgmr.msra.gmra.mxu0 %v828_v38 }
  0x22   :  { %384 = vmatmul.bf16.vlgmr.msra.gmra.mxu1 %v832_v39  ;;  %508 = vmatpush.bf16.msrb.mxu0 %v1006_v52 }
  0x26   :  { %509 = vmatpush.bf16.msrb.mxu0 %v1005_v10 }
  0x2a   :  { %954 = vmatmul.msk.bf16.gmra.mxu2 %vm330_vm1, %v848_v42 }
  0x31   :  { %360 = vmatmul.bf16.gmra.mxu0 %v840_v47 }
  0x32   :  { %389 = vmatmul.bf16.gmra.mxu1 %v844_v48 }
  0x3a   :  { %955 = vmatmul.msk.bf16.gmra.mxu2 %vm330_vm1, %v860_v53 }
  0x41   :  { %365 = vmatmul.bf16.gmra.mxu0 %v852_v59 }
  0x42   :  { %394 = vmatmul.bf16.gmra.mxu1 %v856_v60 }
  0x4a   :  { %956 = vmatmul.msk.bf16.gmra.mxu2 %vm330_vm1, %v872_v63 }
  0x51   :  { %370 = vmatmul.bf16.gmra.mxu0 %v864_v4 }
  0x52   :  { %399 = vmatmul.bf16.gmra.mxu1 %v868_v5 }
  0x6a   :  { %v56_v13 = vpop.permute.xlu2 %55 }
  0x6b   :  { %78 = vst.msk [vmem:[%s1651_s5 + $0x20] sm:$0xff] %vm73_vm2, %v56_v13 }
  0x72   :  { %v61_v14 = vpop.permute.xlu2 %60  ;;  %v86_v52 = vld [vmem:[%s1651_s5 + $0x20] sm:$0xff] }
  0x73   :  { %79 = vst.msk [vmem:[%s1651_s5 + $0x28] sm:$0xff] %vm73_vm2, %v61_v14 }
  0x76   :  { %v36_v6 = vpop.permute.xlu0 %35 }
  0x77   :  { %74 = vst.msk [vmem:[%s1651_s5] sm:$0xff] %vm73_vm2, %v36_v6  ;;  %v46_v7 = vpop.permute.xlu1 %45 }
  0x78   :  { %76 = vst.msk [vmem:[%s1651_s5 + $0x10] sm:$0xff] %vm73_vm2, %v46_v7 }
  0x7a   :  { %v87_v1 = vld [vmem:[%s1651_s5 + $0x28] sm:$0xff] }
  0x7e   :  { %v41_v8 = vpop.permute.xlu0 %40  ;;  %v82_v19 = vld [vmem:[%s1651_s5] sm:$0xff] }
  0x7f   :  { %75 = vst.msk [vmem:[%s1651_s5 + $0x8] sm:$0xff] %vm73_vm2, %v41_v8  ;;  %v51_v9 = vpop.permute.xlu1 %50  ;;  %v84_v33 = vld [vmem:[%s1651_s5 + $0x10] sm:$0xff] }
  0x80   :  { %77 = vst.msk [vmem:[%s1651_s5 + $0x18] sm:$0xff] %vm73_vm2, %v51_v9 }
  0x86   :  { %v66_v11 = vpop.permute.xlu0 %65  ;;  %v83_v27 = vld [vmem:[%s1651_s5 + $0x8] sm:$0xff] }
  0x87   :  { %80 = vst.msk [vmem:[%s1651_s5 + $0x30] sm:$0xff] %vm73_vm2, %v66_v11  ;;  %v71_v12 = vpop.permute.xlu1 %70  ;;  %v85_v46 = vld [vmem:[%s1651_s5 + $0x18] sm:$0xff] }
  0x88   :  { %81 = vst.msk [vmem:[%s1651_s5 + $0x38] sm:$0xff] %vm73_vm2, %v71_v12 }
  0x8e   :  { %v88_v8 = vld [vmem:[%s1651_s5 + $0x30] sm:$0xff] }
  0x9d   :  { %v414_v15 = vpop.f32.mrf.mxu2 }
  0x9e   :  { %v356_v16 = vpop.f32.mrf.mxu0 }
  0x9f   :  { %v385_v17 = vpop.f32.mrf.mxu1 }
  0xa0   :  { %v386_v18 = vadd.f32 %v385_v17, %v356_v16 }
  0xa2   :  { %v415_v20 = vadd.f32 %v414_v15, %v386_v18 }
  0xa4   :  { %v434_v21 = vadd.f32 %v415_v20, %v82_v19  ;;  %v89_v20 = vld [vmem:[%s1651_s5 + $0x38] sm:$0xff] }
  0xa5   :  { %v416_v22 = vpop.f32.mrf.mxu2 }
  0xa6   :  { %443 = vst.msk [vmem:[%s1651_s5] sm:$0xff] %vm73_vm2, %v434_v21  ;;  %v358_v23 = vpop.f32.mrf.mxu0 }
  0xa7   :  { %v387_v24 = vpop.f32.mrf.mxu1 }
  0xa8   :  { %v388_v25 = vadd.f32 %v387_v24, %v358_v23 }
  0xaa   :  { %v417_v26 = vadd.f32 %v416_v22, %v388_v25 }
  0xac   :  { %v435_v28 = vadd.f32 %v417_v26, %v83_v27  ;;  %v759_v27 = vld [vmem:[%s1652_s4] sm:$0x3] }
  0xad   :  { %v419_v29 = vpop.f32.mrf.mxu2  ;;  %v1300_v35 = vld [vmem:[%s1651_s5] sm:$0xff] }
  0xae   :  { %444 = vst.msk [vmem:[%s1651_s5 + $0x8] sm:$0xff] %vm73_vm2, %v435_v28  ;;  %v361_v30 = vpop.f32.mrf.mxu0  ;;  %v462_v40 = vmul.f32 %v1300_v35, %v1300_v35  ;;  %v774_v28 = vsel %vm343_vm0, %v759_v27, 0 }
  0xaf   :  { %v390_v31 = vpop.f32.mrf.mxu1  ;;  %783 = vmatpush.bf16.msrb.mxu3 %v774_v28 }
  0xb0   :  { %v391_v32 = vadd.f32 %v390_v31, %v361_v30 }
  0xb2   :  { %v420_v34 = vadd.f32 %v419_v29, %v391_v32 }
  0xb4   :  { %v436_v36 = vadd.f32 %v420_v34, %v84_v33 }
  0xb5   :  { %v421_v37 = vpop.f32.mrf.mxu2  ;;  %v1305_v38 = vld [vmem:[%s1651_s5 + $0x8] sm:$0xff] }
  0xb6   :  { %445 = vst.msk [vmem:[%s1651_s5 + $0x10] sm:$0xff] %vm73_vm2, %v436_v36  ;;  %v363_v39 = vpop.f32.mrf.mxu0  ;;  %v463_v41 = vmul.f32 %v1305_v38, %v1305_v38 }
  0xb7   :  { %v392_v42 = vpop.f32.mrf.mxu1 }
  0xb8   :  { %v393_v43 = vadd.f32 %v392_v42, %v363_v39  ;;  %v470_v44 = vpack.c.bf16 %v463_v41, %v462_v40 }
  0xba   :  { %v422_v45 = vadd.f32 %v421_v37, %v393_v43  ;;  %965 = vmatmul.msk.bf16.vlgmr.msrb.gmra.mxu0 %vm73_vm2, %v470_v44 }
  0xbc   :  { %v437_v47 = vadd.f32 %v422_v45, %v85_v46 }
  0xbd   :  { %v424_v48 = vpop.f32.mrf.mxu2  ;;  %v1329_v54 = vld [vmem:[%s1651_s5 + $0x10] sm:$0xff] }
  0xbe   :  { %446 = vst.msk [vmem:[%s1651_s5 + $0x18] sm:$0xff] %vm73_vm2, %v437_v47  ;;  %v366_v49 = vpop.f32.mrf.mxu0  ;;  %v464_v59 = vmul.f32 %v1329_v54, %v1329_v54 }
  0xbf   :  { %v395_v50 = vpop.f32.mrf.mxu1 }
  0xc0   :  { %v396_v51 = vadd.f32 %v395_v50, %v366_v49 }
  0xc2   :  { %v425_v53 = vadd.f32 %v424_v48, %v396_v51 }
  0xc4   :  { %v438_v55 = vadd.f32 %v425_v53, %v86_v52 }
  0xc5   :  { %v426_v56 = vpop.f32.mrf.mxu2  ;;  %v1334_v57 = vld [vmem:[%s1651_s5 + $0x18] sm:$0xff] }
  0xc6   :  { %447 = vst.msk [vmem:[%s1651_s5 + $0x20] sm:$0xff] %vm73_vm2, %v438_v55  ;;  %v368_v58 = vpop.f32.mrf.mxu0  ;;  %v465_v60 = vmul.f32 %v1334_v57, %v1334_v57 }
  0xc7   :  { %v397_v61 = vpop.f32.mrf.mxu1 }
  0xc8   :  { %v398_v62 = vadd.f32 %v397_v61, %v368_v58  ;;  %v471_v63 = vpack.c.bf16 %v465_v60, %v464_v59 }
  0xca   :  { %v427_v0 = vadd.f32 %v426_v56, %v398_v62  ;;  %966 = vmatmul.msk.bf16.vlgmr.msrb.gmra.mxu2 %vm73_vm2, %v471_v63 }
  0xcc   :  { %v439_v2 = vadd.f32 %v427_v0, %v87_v1 }
  0xcd   :  { %v429_v4 = vpop.f32.mrf.mxu2  ;;  %v1358_v9 = vld [vmem:[%s1651_s5 + $0x20] sm:$0xff] }
  0xce   :  { %448 = vst.msk [vmem:[%s1651_s5 + $0x28] sm:$0xff] %vm73_vm2, %v439_v2  ;;  %v371_v3 = vpop.f32.mrf.mxu0  ;;  %v466_v13 = vmul.f32 %v1358_v9, %v1358_v9 }
  0xcf   :  { %v400_v5 = vpop.f32.mrf.mxu1 }
  0xd0   :  { %v401_v6 = vadd.f32 %v400_v5, %v371_v3 }
  0xd2   :  { %v430_v7 = vadd.f32 %v429_v4, %v401_v6 }
  0xd4   :  { %v440_v10 = vadd.f32 %v430_v7, %v88_v8 }
  0xd5   :  { %v1363_v11 = vld [vmem:[%s1651_s5 + $0x28] sm:$0xff]  ;;  %v431_v18 = vpop.f32.mrf.mxu2 }
  0xd6   :  { %449 = vst.msk [vmem:[%s1651_s5 + $0x30] sm:$0xff] %vm73_vm2, %v440_v10  ;;  %v373_v12 = vpop.f32.mrf.mxu0  ;;  %v467_v14 = vmul.f32 %v1363_v11, %v1363_v11 }
  0xd7   :  { %v402_v15 = vpop.f32.mrf.mxu1 }
  0xd8   :  { %v403_v16 = vadd.f32 %v402_v15, %v373_v12  ;;  %v472_v17 = vpack.c.bf16 %v467_v14, %v466_v13 }
  0xda   :  { %v432_v19 = vadd.f32 %v431_v18, %v403_v16  ;;  %967 = vmatmul.msk.bf16.vlgmr.msra.gmra.mxu3 %vm73_vm2, %v472_v17 }
  0xdc   :  { %v441_v21 = vadd.f32 %v432_v19, %v89_v20 }
  0xdd   :  { %v1384_v22 = vld [vmem:[%s1651_s5 + $0x30] sm:$0xff] }
  0xde   :  { %450 = vst.msk [vmem:[%s1651_s5 + $0x38] sm:$0xff] %vm73_vm2, %v441_v21  ;;  %v468_v24 = vmul.f32 %v1384_v22, %v1384_v22 }
  0xe5   :  { %v1389_v23 = vld [vmem:[%s1651_s5 + $0x38] sm:$0xff] }
  0xe6   :  { %v469_v25 = vmul.f32 %v1389_v23, %v1389_v23 }
  0xe8   :  { %v473_v26 = vpack.c.bf16 %v469_v25, %v468_v24 }
  0xea   :  { %968 = vmatmul.msk.bf16.gmra.mxu3 %vm73_vm2, %v473_v26 }
 0x137   :  { %v511_v29 = vpop.f32.mrf.mxu0 }
 0x138   :  { %1015 = vrsqrt.f32 %v511_v29  ;;  %v627_v30 = vadd.f32 1.0, %v511_v29  ;;  %vm538_vm3 = vcmp.eq.f32.partialorder %v511_v29, inf  ;;  %vm540_vm9 = vcmp.eq.f32.partialorder %v511_v29, 0.0 }
 0x139   :  { %v541_v4 = vand.u32 2147483648, %v511_v29 }
 0x13a   :  { %1017 = vrcp.f32 %v627_v30  ;;  %vm640_vm4 = vweird.f32 %v627_v30  ;;  %v644_v53 = vand.u32 2147483647, %v627_v30  ;;  %v646_v55 = vand.u32 2147483648, %v627_v30 }
 0x13c   :  { %v647_v8 = vor.u32 1.1754944e-38, %v646_v55  ;;  %vm645_vm13 = vcmp.eq.f32.partialorder %v644_v53, 8.507059e+37 }
 0x13e   :  { %v1016_v31 = vpop.eup %1015 }
 0x13f   :  { %v532_v32 = vmul.f32 %v1016_v31, %v511_v29  ;;  %v513_v33 = vpop.f32.mrf.mxu0 }
 0x140   :  { %v1018_v34 = vpop.eup %1017  ;;  %1019 = vrsqrt.f32 %v513_v33  ;;  %v628_v36 = vadd.f32 1.0, %v513_v33  ;;  %vm550_vm11 = vcmp.eq.f32.partialorder %v513_v33, inf  ;;  %v553_v13 = vand.u32 2147483648, %v513_v33 }
 0x141   :  { %v533_v37 = vmul.f32 %v1016_v31, %v532_v32  ;;  %v636_v39 = vmul.f32 %v1018_v34, %v627_v30  ;;  %vm641_vm5 = vweird.f32 %v1018_v34  ;;  %vm552_vm12 = vcmp.eq.f32.partialorder %v513_v33, 0.0 }
 0x142   :  { %1021 = vrcp.f32 %v628_v36  ;;  %vm655_vm7 = vweird.f32 %v628_v36  ;;  %v661_v62 = vand.u32 2147483648, %v628_v36  ;;  %vm1408_vm8 = vmor %vm640_vm4, %vm641_vm5  ;;  %v659_v3 = vand.u32 2147483647, %v628_v36 }
 0x143   :  { %v534_v40 = vmul.f32 0.5, %v533_v37  ;;  %v637_v42 = vsub.f32 1.0, %v636_v39 }
 0x144   :  { %v662_v14 = vor.u32 1.1754944e-38, %v661_v62  ;;  %vm660_vm14 = vcmp.eq.f32.partialorder %v659_v3, 8.507059e+37 }
 0x145   :  { %v535_v41 = vsub.f32 1.5, %v534_v40  ;;  %v638_v48 = vmul.f32 %v1018_v34, %v637_v42 }
 0x146   :  { %v1020_v43 = vpop.eup %1019 }
 0x147   :  { %v544_v44 = vmul.f32 %v1020_v43, %v513_v33  ;;  %v536_v45 = vmul.f32 %v1016_v31, %v535_v41  ;;  %v639_v59 = vadd.f32 %v1018_v34, %v638_v48 }
 0x148   :  { %v1022_v46 = vpop.eup %1021 }
 0x149   :  { %v545_v47 = vmul.f32 %v1020_v43, %v544_v44  ;;  %v651_v49 = vmul.f32 %v1022_v46, %v628_v36  ;;  %v537_v51 = vmul.f32 %v536_v45, %v511_v29  ;;  %vm656_vm6 = vweird.f32 %v1022_v46 }
 0x14a   :  { %vm1413_vm10 = vmor %vm655_vm7, %vm656_vm6  ;;  %v643_v7 = vsel %vm1408_vm8, %v1018_v34, %v639_v59 }
 0x14b   :  { %v546_v50 = vmul.f32 0.5, %v545_v47  ;;  %v652_v52 = vsub.f32 1.0, %v651_v49  ;;  %v539_v0 = vsel %vm538_vm3, %v511_v29, %v537_v51  ;;  %v648_v18 = vsel %vm645_vm13, %v647_v8, %v643_v7 }
 0x14c   :  { %v542_v12 = vsel %vm540_vm9, %v541_v4, %v539_v0 }
 0x14d   :  { %v547_v56 = vsub.f32 1.5, %v546_v50  ;;  %v1400_v58 = vpop.f32.mrf.mxu2  ;;  %v653_v60 = vmul.f32 %v1022_v46, %v652_v52  ;;  %v649_v24 = vmul.f32 %v648_v18, %v542_v12 }
 0x14e   :  { %1023 = vrsqrt.f32 %v1400_v58  ;;  %v1404_v61 = vadd.f32 1.0, %v1400_v58  ;;  %vm562_vm0 = vcmp.eq.f32.partialorder %v1400_v58, inf  ;;  %vm564_vm1 = vcmp.eq.f32.partialorder %v1400_v58, 0.0 }
 0x14f   :  { %v548_v63 = vmul.f32 %v1020_v43, %v547_v56  ;;  %v654_v2 = vadd.f32 %v1022_v46, %v653_v60  ;;  %v565_v50 = vand.u32 2147483648, %v1400_v58 }
 0x150   :  { %1025 = vrcp.f32 %v1404_v61  ;;  %v674_v42 = vand.u32 2147483647, %v1404_v61  ;;  %vm670_vm3 = vweird.f32 %v1404_v61 }
 0x151   :  { %v549_v6 = vmul.f32 %v548_v63, %v513_v33  ;;  %v658_v10 = vsel %vm1413_vm10, %v1022_v46, %v654_v2  ;;  %v676_v46 = vand.u32 2147483648, %v1404_v61 }
 0x152   :  { %v663_v19 = vsel %vm660_vm14, %v662_v14, %v658_v10  ;;  %vm1452_vm5 = vcmp.eq.f32.partialorder %v674_v42, 8.507059e+37 }
 0x153   :  { %v551_v15 = vsel %vm550_vm11, %v513_v33, %v549_v6  ;;  %v677_v59 = vor.u32 1.1754944e-38, %v676_v46 }
 0x154   :  { %v1024_v16 = vpop.eup %1023  ;;  %v554_v17 = vsel %vm552_vm12, %v553_v13, %v551_v15 }
 0x155   :  { %v556_v20 = vmul.f32 %v1024_v16, %v1400_v58  ;;  %v1422_v21 = vpop.f32.mrf.mxu2  ;;  %v664_v25 = vmul.f32 %v663_v19, %v554_v17 }
 0x156   :  { %v1424_v26 = vpop.eup %1025  ;;  %1027 = vrsqrt.f32 %v1422_v21  ;;  %v1428_v27 = vadd.f32 1.0, %v1422_v21  ;;  %vm574_vm9 = vcmp.eq.f32.partialorder %v1422_v21, inf  ;;  %v577_v7 = vand.u32 2147483648, %v1422_v21 }
 0x157   :  { %v755_v28 = vpack.c.bf16 %v664_v25, %v649_v24  ;;  %v557_v29 = vmul.f32 %v1024_v16, %v556_v20  ;;  %v666_v30 = vmul.f32 %v1424_v26, %v1404_v61  ;;  %vm671_vm4 = vweird.f32 %v1424_v26 }
 0x158   :  { %1029 = vrcp.f32 %v1428_v27  ;;  %vm685_vm7 = vweird.f32 %v1428_v27  ;;  %v689_v60 = vand.u32 2147483647, %v1428_v27  ;;  %v691_v62 = vand.u32 2147483648, %v1428_v27  ;;  %vm1470_vm8 = vmor %vm670_vm3, %vm671_vm4 }
 0x159   :  { %969 = vmatmul.msk.bf16.vlgmr.msrb.gmra.mxu3 %vm760_vm15, %v755_v28  ;;  %v558_v31 = vmul.f32 0.5, %v557_v29  ;;  %v667_v33 = vsub.f32 1.0, %v666_v30  ;;  %vm576_vm11 = vcmp.eq.f32.partialorder %v1422_v21, 0.0 }
 0x15a   :  { %v692_v15 = vor.u32 1.1754944e-38, %v691_v62  ;;  %vm690_vm12 = vcmp.eq.f32.partialorder %v689_v60, 8.507059e+37 }
 0x15b   :  { %v559_v32 = vsub.f32 1.5, %v558_v31  ;;  %v668_v44 = vmul.f32 %v1424_v26, %v667_v33 }
 0x15c   :  { %v1028_v34 = vpop.eup %1027 }
 0x15d   :  { %v568_v36 = vmul.f32 %v1028_v34, %v1422_v21  ;;  %v1435_v37 = vpop.f32.mrf.mxu3  ;;  %v560_v39 = vmul.f32 %v1024_v16, %v559_v32  ;;  %v669_v53 = vadd.f32 %v1424_v26, %v668_v44 }
 0x15e   :  { %v1030_v40 = vpop.eup %1029  ;;  %1031 = vrsqrt.f32 %v1435_v37  ;;  %v1439_v41 = vadd.f32 1.0, %v1435_v37  ;;  %vm586_vm13 = vcmp.eq.f32.partialorder %v1435_v37, inf  ;;  %vm588_vm14 = vcmp.eq.f32.partialorder %v1435_v37, 0.0 }
 0x15f   :  { %v569_v43 = vmul.f32 %v1028_v34, %v568_v36  ;;  %v681_v45 = vmul.f32 %v1030_v40, %v1428_v27  ;;  %v561_v48 = vmul.f32 %v560_v39, %v1400_v58  ;;  %vm686_vm6 = vweird.f32 %v1030_v40 }
 0x160   :  { %1033 = vrcp.f32 %v1439_v41  ;;  %vm1483_vm10 = vmor %vm685_vm7, %vm686_vm6  ;;  %v673_v10 = vsel %vm1470_vm8, %v1424_v26, %v669_v53  ;;  %v706_v42 = vand.u32 2147483648, %v1439_v41  ;;  %v589_v46 = vand.u32 2147483648, %v1435_v37 }
 0x161   :  { %v570_v47 = vmul.f32 0.5, %v569_v43  ;;  %v682_v49 = vsub.f32 1.0, %v681_v45  ;;  %v563_v1 = vsel %vm562_vm0, %v1400_v58, %v561_v48  ;;  %v678_v20 = vsel %vm1452_vm5, %v677_v59, %v673_v10 }
 0x162   :  { %v566_v14 = vsel %vm564_vm1, %v565_v50, %v563_v1  ;;  %vm700_vm0 = vweird.f32 %v1439_v41 }
 0x163   :  { %v571_v52 = vsub.f32 1.5, %v570_v47  ;;  %v683_v55 = vmul.f32 %v1030_v40, %v682_v49  ;;  %v679_v25 = vmul.f32 %v678_v20, %v566_v14 }
 0x164   :  { %v1032_v56 = vpop.eup %1031 }
 0x165   :  { %v580_v63 = vmul.f32 %v1032_v56, %v1435_v37  ;;  %v1461_v0 = vpop.f32.mrf.mxu3  ;;  %v572_v2 = vmul.f32 %v1028_v34, %v571_v52  ;;  %v684_v4 = vadd.f32 %v1030_v40, %v683_v55  ;;  %v704_v34 = vand.u32 2147483647, %v1439_v41 }
 0x166   :  { %v1474_v5 = vpop.eup %1033  ;;  %1035 = vrsqrt.f32 %v1461_v0  ;;  %v1478_v6 = vadd.f32 1.0, %v1461_v0  ;;  %v707_v52 = vor.u32 1.1754944e-38, %v706_v42  ;;  %vm598_vm7 = vcmp.eq.f32.partialorder %v1461_v0, inf }
 0x167   :  { %v573_v61 = vmul.f32 %v572_v2, %v1422_v21  ;;  %v688_v12 = vsel %vm1483_vm10, %v1030_v40, %v684_v4  ;;  %v581_v13 = vmul.f32 %v1032_v56, %v580_v63  ;;  %v696_v16 = vmul.f32 %v1474_v5, %v1439_v41 }
 0x168   :  { %1037 = vrcp.f32 %v1478_v6  ;;  %v693_v24 = vsel %vm690_vm12, %v692_v15, %v688_v12  ;;  %vm701_vm1 = vweird.f32 %v1474_v5  ;;  %vm1521_vm3 = vcmp.eq.f32.partialorder %v704_v34, 8.507059e+37 }
 0x169   :  { %v575_v17 = vsel %vm574_vm9, %v1422_v21, %v573_v61  ;;  %v582_v18 = vmul.f32 0.5, %v581_v13  ;;  %v697_v58 = vsub.f32 1.0, %v696_v16  ;;  %vm715_vm5 = vweird.f32 %v1478_v6  ;;  %vm1539_vm6 = vmor %vm700_vm0, %vm701_vm1 }
 0x16a   :  { %v578_v19 = vsel %vm576_vm11, %v577_v7, %v575_v17  ;;  %v719_v53 = vand.u32 2147483647, %v1478_v6  ;;  %v721_v55 = vand.u32 2147483648, %v1478_v6  ;;  %v601_v4 = vand.u32 2147483648, %v1461_v0 }
 0x16b   :  { %v694_v26 = vmul.f32 %v693_v24, %v578_v19  ;;  %v583_v27 = vsub.f32 1.5, %v582_v18  ;;  %v698_v39 = vmul.f32 %v1474_v5, %v697_v58  ;;  %vm600_vm9 = vcmp.eq.f32.partialorder %v1461_v0, 0.0 }
 0x16c   :  { %v1036_v28 = vpop.eup %1035  ;;  %v722_v12 = vor.u32 1.1754944e-38, %v721_v55  ;;  %vm720_vm10 = vcmp.eq.f32.partialorder %v719_v53, 8.507059e+37 }
 0x16d   :  { %v592_v29 = vmul.f32 %v1036_v28, %v1461_v0  ;;  %v1503_v30 = vpop.f32.mrf.mxu3  ;;  %v756_v31 = vpack.c.bf16 %v694_v26, %v679_v25  ;;  %v584_v32 = vmul.f32 %v1032_v56, %v583_v27  ;;  %v699_v49 = vadd.f32 %v1474_v5, %v698_v39 }
 0x16e   :  { %v1038_v33 = vpop.eup %1037  ;;  %1039 = vrsqrt.f32 %v1503_v30  ;;  %v1507_v21 = vadd.f32 1.0, %v1503_v30  ;;  %vm610_vm11 = vcmp.eq.f32.partialorder %v1503_v30, inf }
 0x16f   :  { %970 = vmatmul.msk.bf16.gmra.mxu3 %vm760_vm15, %v756_v31  ;;  %v593_v36 = vmul.f32 %v1036_v28, %v592_v29  ;;  %v711_v40 = vmul.f32 %v1038_v33, %v1478_v6  ;;  %v585_v43 = vmul.f32 %v584_v32, %v1435_v37  ;;  %vm716_vm4 = vweird.f32 %v1038_v33 }
 0x170   :  { %1041 = vrcp.f32 %v1507_v21  ;;  %vm1552_vm8 = vmor %vm715_vm5, %vm716_vm4  ;;  %v703_v7 = vsel %vm1539_vm6, %v1474_v5, %v699_v49  ;;  %v736_v34 = vand.u32 2147483648, %v1507_v21  ;;  %v734_v42 = vand.u32 2147483647, %v1507_v21 }
 0x171   :  { %v594_v44 = vmul.f32 0.5, %v593_v36  ;;  %v712_v45 = vsub.f32 1.0, %v711_v40  ;;  %v587_v60 = vsel %vm586_vm13, %v1435_v37, %v585_v43  ;;  %v708_v16 = vsel %vm1521_vm3, %v707_v52, %v703_v7 }
 0x172   :  { %v590_v10 = vsel %vm588_vm14, %v589_v46, %v587_v60  ;;  %vm730_vm14 = vweird.f32 %v1507_v21  ;;  %vm612_vm3 = vcmp.eq.f32.partialorder %v1503_v30, 0.0  ;;  %v613_v49 = vand.u32 2147483648, %v1503_v30 }
 0x173   :  { %v595_v48 = vsub.f32 1.5, %v594_v44  ;;  %v713_v50 = vmul.f32 %v1038_v33, %v712_v45  ;;  %v709_v18 = vmul.f32 %v708_v16, %v590_v10  ;;  %v737_v52 = vor.u32 1.1754944e-38, %v736_v34 }
 0x174   :  { %v1040_v51 = vpop.eup %1039 }
 0x175   :  { %v604_v56 = vmul.f32 %v1040_v51, %v1503_v30  ;;  %v1530_v59 = vpop.f32.mrf.mxu3  ;;  %v596_v62 = vmul.f32 %v1036_v28, %v595_v48  ;;  %v714_v1 = vadd.f32 %v1038_v33, %v713_v50 }
 0x176   :  { %v1543_v2 = vpop.eup %1041  ;;  %1043 = vrsqrt.f32 %v1530_v59  ;;  %v1547_v3 = vadd.f32 1.0, %v1530_v59  ;;  %vm622_vm5 = vcmp.eq.f32.partialorder %v1530_v59, inf  ;;  %vm624_vm6 = vcmp.eq.f32.partialorder %v1530_v59, 0.0 }
 0x177   :  { %v597_v41 = vmul.f32 %v596_v62, %v1461_v0  ;;  %v718_v8 = vsel %vm1552_vm8, %v1038_v33, %v714_v1  ;;  %v605_v61 = vmul.f32 %v1040_v51, %v604_v56  ;;  %v726_v13 = vmul.f32 %v1543_v2, %v1507_v21 }
 0x178   :  { %1045 = vrcp.f32 %v1547_v3  ;;  %v723_v17 = vsel %vm720_vm10, %v722_v12, %v718_v8  ;;  %vm731_vm12 = vweird.f32 %v1543_v2  ;;  %vm745_vm0 = vweird.f32 %v1547_v3 }
 0x179   :  { %v599_v14 = vsel %vm598_vm7, %v1461_v0, %v597_v41  ;;  %v606_v15 = vmul.f32 0.5, %v605_v61  ;;  %v727_v37 = vsub.f32 1.0, %v726_v13  ;;  %v751_v43 = vand.u32 2147483648, %v1547_v3  ;;  %vm1585_vm1 = vmor %vm730_vm14, %vm731_vm12 }
 0x17a   :  { %v602_v5 = vsel %vm600_vm9, %v601_v4, %v599_v14  ;;  %v749_v48 = vand.u32 2147483647, %v1547_v3  ;;  %v625_v56 = vand.u32 2147483648, %v1530_v59  ;;  %vm735_vm7 = vcmp.eq.f32.partialorder %v734_v42, 8.507059e+37 }
 0x17b   :  { %v724_v19 = vmul.f32 %v723_v17, %v602_v5  ;;  %v607_v20 = vsub.f32 1.5, %v606_v15  ;;  %v728_v28 = vmul.f32 %v1543_v2, %v727_v37 }
 0x17c   :  { %v1044_v24 = vpop.eup %1043  ;;  %vm750_vm8 = vcmp.eq.f32.partialorder %v749_v48, 8.507059e+37 }
 0x17d   :  { %v616_v25 = vmul.f32 %v1044_v24, %v1530_v59  ;;  %v757_v26 = vpack.c.bf16 %v724_v19, %v709_v18  ;;  %v608_v27 = vmul.f32 %v1040_v51, %v607_v20  ;;  %v729_v39 = vadd.f32 %v1543_v2, %v728_v28 }
 0x17e   :  { %v1046_v58 = vpop.eup %1045 }
 0x17f   :  { %971 = vmatmul.msk.bf16.gmra.mxu3 %vm760_vm15, %v757_v26  ;;  %v617_v0 = vmul.f32 %v1044_v24, %v616_v25  ;;  %v741_v29 = vmul.f32 %v1046_v58, %v1547_v3  ;;  %v609_v31 = vmul.f32 %v608_v27, %v1503_v30  ;;  %vm746_vm13 = vweird.f32 %v1046_v58 }
 0x180   :  { %vm1592_vm4 = vmor %vm745_vm0, %vm746_vm13  ;;  %v733_v51 = vsel %vm1585_vm1, %v1543_v2, %v729_v39 }
 0x181   :  { %v618_v32 = vmul.f32 0.5, %v617_v0  ;;  %v742_v33 = vsub.f32 1.0, %v741_v29  ;;  %v611_v44 = vsel %vm610_vm11, %v1503_v30, %v609_v31  ;;  %v752_v30 = vor.u32 1.1754944e-38, %v751_v43 }
 0x182   :  { %v614_v55 = vsel %vm612_vm3, %v613_v49, %v611_v44  ;;  %v738_v63 = vsel %vm735_vm7, %v737_v52, %v733_v51 }
 0x183   :  { %v619_v36 = vsub.f32 1.5, %v618_v32  ;;  %v743_v40 = vmul.f32 %v1046_v58, %v742_v33  ;;  %v739_v2 = vmul.f32 %v738_v63, %v614_v55 }
 0x185   :  { %v620_v45 = vmul.f32 %v1044_v24, %v619_v36  ;;  %v744_v47 = vadd.f32 %v1046_v58, %v743_v40 }
 0x187   :  { %v621_v50 = vmul.f32 %v620_v45, %v1530_v59  ;;  %v748_v53 = vsel %vm1592_vm4, %v1046_v58, %v744_v47 }
 0x188   :  { %v753_v1 = vsel %vm750_vm8, %v752_v30, %v748_v53 }
 0x189   :  { %v623_v60 = vsel %vm622_vm5, %v1530_v59, %v621_v50 }
 0x18a   :  { %v626_v62 = vsel %vm624_vm6, %v625_v56, %v623_v60 }
 0x18b   :  { %v754_v3 = vmul.f32 %v753_v1, %v626_v62 }
 0x18d   :  { %v758_v4 = vpack.c.bf16 %v754_v3, %v739_v2 }
 0x18f   :  { %972 = vmatmul.msk.bf16.gmra.mxu3 %vm760_vm15, %v758_v4 }
 0x1dc   :  { %v785_v6 = vpop.f32.mrf.mxu3 }
 0x1dd   :  { %v805_v41 = vmul.f32 %v785_v6, %v1300_v35 }
 0x1df   :  { %813 = vst.msk [vmem:[%s1651_s5] sm:$0xff] %vm73_vm2, %v805_v41 }
 0x1e4   :  { %v787_v7 = vpop.f32.mrf.mxu3 }
 0x1e5   :  { %v806_v59 = vmul.f32 %v787_v7, %v1305_v38 }
 0x1e7   :  { %814 = vst.msk [vmem:[%s1651_s5 + $0x8] sm:$0xff] %vm73_vm2, %v806_v59 }
 0x1f2   :  { %v790_v8 = vpop.f32.mrf.mxu3 }
 0x1f3   :  { %v807_v61 = vmul.f32 %v790_v8, %v1329_v54 }
 0x1f5   :  { %815 = vst.msk [vmem:[%s1651_s5 + $0x10] sm:$0xff] %vm73_vm2, %v807_v61 }
 0x1fa   :  { %v792_v35 = vpop.f32.mrf.mxu3 }
 0x1fb   :  { %v808_v10 = vmul.f32 %v792_v35, %v1334_v57 }
 0x1fd   :  { %816 = vst.msk [vmem:[%s1651_s5 + $0x18] sm:$0xff] %vm73_vm2, %v808_v10 }
 0x202   :  { %v795_v38 = vpop.f32.mrf.mxu3 }
 0x203   :  { %v809_v12 = vmul.f32 %v795_v38, %v1358_v9 }
 0x205   :  { %817 = vst.msk [vmem:[%s1651_s5 + $0x20] sm:$0xff] %vm73_vm2, %v809_v12 }
 0x20a   :  { %v797_v54 = vpop.f32.mrf.mxu3 }
 0x20b   :  { %v810_v13 = vmul.f32 %v797_v54, %v1363_v11 }
 0x20d   :  { %818 = vst.msk [vmem:[%s1651_s5 + $0x28] sm:$0xff] %vm73_vm2, %v810_v13 }
 0x212   :  { %v800_v57 = vpop.f32.mrf.mxu3 }
 0x213   :  { %v811_v14 = vmul.f32 %v800_v57, %v1384_v22 }
 0x215   :  { %819 = vst.msk [vmem:[%s1651_s5 + $0x30] sm:$0xff] %vm73_vm2, %v811_v14 }
 0x21a   :  { %v802_v9 = vpop.f32.mrf.mxu3 }
 0x21b   :  { %v812_v15 = vmul.f32 %v802_v9, %v1389_v23 }
 0x21d   :  { %820 = vst.msk [vmem:[%s1651_s5 + $0x38] sm:$0xff] %vm73_vm2, %v812_v15 }

</bundles_post_ra>
